<compile_context>
chip_gen: v7x
topology: tpu7x:2x2x1
jax: 0.10.0
libtpu: 0.0.40
codegen_flags: <defaults>
</compile_context>

<pallas_src>
import math
import functools

import jax
import jax.numpy as jnp
import numpy as np
from jax.experimental import pallas as pl
from jax.experimental.pallas import tpu as pltpu


def mhsa_kernel(x_ref, wqkv_ref, bqkv_ref, wfin_ref, bfin_ref, *rest,
                num_head, approx_recip, with_attn):
    # x_ref:    (B, S, D)    compute dtype (bf16 on the fast path)
    # wqkv_ref: (D, 3D)      compute dtype, fused q/k/v projection (scale folded in)
    # bqkv_ref: (1, 3D)      f32 bias (scale folded into the q part)
    # wfin_ref: (D, D)       compute dtype, final projection (w_final.T)
    # bfin_ref: (1, D)       f32 bias
    # rest: (attn_ref?, out_ref, qkv_scr, ctx_scr)
    if with_attn:
        attn_ref, out_ref, qkv_scr, ctx_scr = rest
    else:
        out_ref, qkv_scr, ctx_scr = rest

    B, S, D = x_ref.shape
    hd = D // num_head
    cdt = x_ref.dtype

    # ---- Fused QKV projection: one lane-dense (B*S, D) x (D, 3D) matmul. ----
    x2 = x_ref[...].reshape(B * S, D)
    qkv = jnp.dot(x2, wqkv_ref[...],
                  preferred_element_type=jnp.float32) + bqkv_ref[...]
    qkv_scr[...] = qkv.astype(cdt).reshape(B, S, 3 * D)

    # ---- Per-head attention (batched over the B sequences of this step). ----
    for h in range(num_head):
        q_h = qkv_scr[:, :, h * hd:(h + 1) * hd]                 # (B, S, hd)
        k_h = qkv_scr[:, :, D + h * hd:D + (h + 1) * hd]         # (B, S, hd)
        v_h = qkv_scr[:, :, 2 * D + h * hd:2 * D + (h + 1) * hd]  # (B, S, hd)

        # Scores (scale already folded into the q weights/bias).
        s = jnp.einsum('bqd,bkd->bqk', q_h, k_h,
                       preferred_element_type=jnp.float32)       # (B, S, S) f32

        # Numerically stable softmax in f32; EUP reciprocal, not a VALU divide.
        s = s - jnp.max(s, axis=-1, keepdims=True)
        e = jnp.exp(s)
        p = e * pl.reciprocal(jnp.sum(e, axis=-1, keepdims=True),
                              approx=approx_recip)               # (B, S, S) f32

        if with_attn:
            attn_ref[:, h] = p.astype(attn_ref.dtype)

        ctx = jnp.einsum('bqk,bkd->bqd', p.astype(cdt), v_h,
                         preferred_element_type=jnp.float32)     # (B, S, hd) f32
        ctx_scr[:, :, h * hd:(h + 1) * hd] = ctx.astype(cdt)

    # ---- Fused output projection: single (B*S, D) x (D, D) matmul (K = D). ----
    ctx2 = ctx_scr[...].reshape(B * S, D)
    out = jnp.dot(ctx2, wfin_ref[...],
                  preferred_element_type=jnp.float32) + bfin_ref[...]
    out_ref[...] = out.reshape(B, S, D).astype(out_ref.dtype)


def _pick_batch_tile(bs, seqlen, model_dim, num_head, compute_dtype,
                     return_attn_prob, attn_dtype, budget_bytes=8 * 1024 * 1024):
    """Largest divisor of bs whose per-step working set fits a small VMEM budget."""
    cb = jnp.dtype(compute_dtype).itemsize
    ab = jnp.dtype(attn_dtype).itemsize
    per_b = (seqlen * model_dim * cb * 2          # x block (double buffered)
             + seqlen * model_dim * 4 * 2         # out block f32 (double buffered)
             + seqlen * 3 * model_dim * cb        # qkv scratch
             + seqlen * model_dim * cb            # ctx scratch
             + 3 * seqlen * seqlen * 4)           # per-head f32 softmax temporaries
    if return_attn_prob:
        per_b += num_head * seqlen * seqlen * ab * 2
    cap = int(min(bs, max(1, budget_bytes // max(1, per_b))))
    for d in range(cap, 0, -1):
        if bs % d == 0:
            return d
    return 1


def multi_head_self_attention(x, w_proj, b_proj, w_final, b_final, num_head,
                              *, compute_dtype=jnp.bfloat16,
                              return_attn_prob=True,
                              attn_dtype=jnp.float32,
                              batch_tile=None):
    """Matches MultiHeadSelfAttention.forward (additive_mask is dead code).

    x: (bs, S, D). PyTorch nn.Linear weights: w_proj (3D, D), b_proj (3D,),
    w_final (D, D), b_final (D,). Returns (attn_prob, output) like the module,
    or just output if return_attn_prob=False.
    """
    bs, seqlen, model_dim = x.shape
    head_dim = model_dim // num_head
    assert num_head * head_dim == model_dim
    cdt = jnp.dtype(compute_dtype)

    # Fused QKV weights (D, 3D) with 1/sqrt(head_dim) folded into the q part.
    scale = 1.0 / math.sqrt(head_dim)
    col_scale = jnp.concatenate([
        jnp.full((model_dim,), scale, jnp.float32),
        jnp.ones((2 * model_dim,), jnp.float32)])
    w32 = jnp.asarray(w_proj, jnp.float32) * col_scale[:, None]   # (3D, D)
    wqkv = w32.T.astype(cdt)                                      # (D, 3D)
    bqkv = (jnp.asarray(b_proj, jnp.float32) * col_scale)[None, :]  # (1, 3D) f32

    wfin = jnp.asarray(w_final, jnp.float32).T.astype(cdt)        # (D, D)
    bfin = jnp.asarray(b_final, jnp.float32)[None, :]             # (1, D) f32

    x_c = jnp.asarray(x, jnp.float32).astype(cdt)                 # (bs, S, D)

    if batch_tile is None:
        b_tile = _pick_batch_tile(bs, seqlen, model_dim, num_head, cdt,
                                  return_attn_prob, attn_dtype)
    else:
        b_tile = int(batch_tile)
        assert bs % b_tile == 0, "batch_tile must divide the batch size"

    kernel = functools.partial(
        mhsa_kernel,
        num_head=num_head,
        approx_recip=(cdt != jnp.dtype(jnp.float32)),
        with_attn=return_attn_prob)

    out_shape = []
    out_specs = []
    if return_attn_prob:
        out_shape.append(jax.ShapeDtypeStruct(
            (bs, num_head, seqlen, seqlen), jnp.dtype(attn_dtype)))
        out_specs.append(pl.BlockSpec((b_tile, num_head, seqlen, seqlen),
                                      lambda b: (b, 0, 0, 0)))
    out_shape.append(jax.ShapeDtypeStruct((bs, seqlen, model_dim), jnp.float32))
    out_specs.append(pl.BlockSpec((b_tile, seqlen, model_dim),
                                  lambda b: (b, 0, 0)))

    results = pl.pallas_call(
        kernel,
        out_shape=tuple(out_shape),
        grid_spec=pltpu.PrefetchScalarGridSpec(
            num_scalar_prefetch=0,
            grid=(bs // b_tile,),
            in_specs=[
                pl.BlockSpec((b_tile, seqlen, model_dim), lambda b: (b, 0, 0)),
                # Grid-invariant weight blocks (same block every step → resident).
                pl.BlockSpec((model_dim, 3 * model_dim), lambda b: (0, 0)),
                pl.BlockSpec((1, 3 * model_dim), lambda b: (0, 0)),
                pl.BlockSpec((model_dim, model_dim), lambda b: (0, 0)),
                pl.BlockSpec((1, model_dim), lambda b: (0, 0)),
            ],
            out_specs=tuple(out_specs),
            scratch_shapes=[
                pltpu.VMEM((b_tile, seqlen, 3 * model_dim), cdt),   # fused qkv
                pltpu.VMEM((b_tile, seqlen, model_dim), cdt),       # per-head ctx slab
            ]),
        compiler_params=pltpu.CompilerParams(
            dimension_semantics=("parallel",),
            vmem_limit_bytes=32 * 1024 * 1024,
        ),
    )(x_c, wqkv, bqkv, wfin, bfin)

    if return_attn_prob:
        attn_prob, output = results
        # Match the PyTorch (bs*num_head, S, S) layout (batch-major, head-minor).
        return attn_prob.reshape(bs * num_head, seqlen, seqlen), output
    (output,) = results
    return output


def _reference(x, w_proj, b_proj, w_final, b_final, num_head):
    """Pure-JAX reference matching the PyTorch forward exactly (f32, highest precision)."""
    bs, seqlen, model_dim = x.shape
    head_dim = model_dim // num_head
    proj = jnp.einsum('bsd,fd->bsf', x, w_proj, precision='highest') + b_proj
    q, k, v = jnp.split(proj, 3, axis=-1)

    def heads(t):
        t = t.reshape(bs, seqlen, num_head, head_dim).transpose(0, 2, 1, 3)
        return t.reshape(bs * num_head, seqlen, head_dim)

    q, k, v = heads(q), heads(k), heads(v)
    scores = jnp.einsum('bij,bkj->bik', q, k,
                        precision='highest') / math.sqrt(head_dim)
    attn = jax.nn.softmax(scores, axis=-1)
    out = jnp.einsum('bik,bkj->bij', attn, v, precision='highest')
    out = out.reshape(bs, num_head, seqlen, head_dim).transpose(0, 2, 1, 3)
    out = out.reshape(bs, seqlen, model_dim)
    out = jnp.einsum('bsd,fd->bsf', out, w_final, precision='highest') + b_final
    return attn, out


if __name__ == "__main__":
    bs, seqlen, model_dim, num_head = 2, 8, 32, 4

    key = jax.random.PRNGKey(0)
    k1, k2, k3, k4, k5 = jax.random.split(key, 5)

    x = jax.random.normal(k1, (bs, seqlen, model_dim), jnp.float32)
    bound = 1.0 / math.sqrt(model_dim)
    w_proj = jax.random.uniform(k2, (3 * model_dim, model_dim), jnp.float32,
                                -bound, bound)
    b_proj = jax.random.uniform(k3, (3 * model_dim,), jnp.float32, -bound, bound)
    w_final = jax.random.uniform(k4, (model_dim, model_dim), jnp.float32,
                                 -bound, bound)
    b_final = jax.random.uniform(k5, (model_dim,), jnp.float32, -bound, bound)

    attn_expected, out_expected = _reference(x, w_proj, b_proj, w_final,
                                             b_final, num_head)

    # 1) f32 compute path, batch_tile=1 (exercises a multi-step grid): tight check.
    attn32, out32 = multi_head_self_attention(
        x, w_proj, b_proj, w_final, b_final, num_head,
        compute_dtype=jnp.float32, batch_tile=1)
    jax.block_until_ready((attn32, out32))
    np.testing.assert_allclose(np.asarray(attn32), np.asarray(attn_expected),
                               atol=1e-4, rtol=1e-4)
    np.testing.assert_allclose(np.asarray(out32), np.asarray(out_expected),
                               atol=1e-4, rtol=1e-4)

    # 2) bf16 MXU fast path (default; auto batch tiling): relaxed tolerance.
    attn16, out16 = multi_head_self_attention(
        x, w_proj, b_proj, w_final, b_final, num_head)
    jax.block_until_ready((attn16, out16))
    np.testing.assert_allclose(np.asarray(attn16), np.asarray(attn_expected),
                               atol=2e-2, rtol=2e-2)
    np.testing.assert_allclose(np.asarray(out16), np.asarray(out_expected),
                               atol=2e-2, rtol=2e-2)

    # 3) bf16 attention-probability writeback (halves the dominant HBM store).
    attn_b16, out_b16 = multi_head_self_attention(
        x, w_proj, b_proj, w_final, b_final, num_head,
        attn_dtype=jnp.bfloat16)
    jax.block_until_ready((attn_b16, out_b16))
    np.testing.assert_allclose(np.asarray(attn_b16, dtype=np.float32),
                               np.asarray(attn_expected), atol=2e-2, rtol=2e-2)
    np.testing.assert_allclose(np.asarray(out_b16), np.asarray(out_expected),
                               atol=2e-2, rtol=2e-2)

    # 4) Perf variant that skips the attention-probability writeback entirely.
    out_only = multi_head_self_attention(
        x, w_proj, b_proj, w_final, b_final, num_head,
        return_attn_prob=False)
    jax.block_until_ready(out_only)
    np.testing.assert_allclose(np.asarray(out_only), np.asarray(out_expected),
                               atol=2e-2, rtol=2e-2)

    print("KERNEL_OK")
</pallas_src>

<mosaic_0001>
module attributes {stable_mosaic.version = 11 : i64} {
  func.func @mhsa_kernel(%arg0: i32, %arg1: memref<1x8x32xf32, #tpu.memory_space<vmem>>, %arg2: memref<32x96xf32, #tpu.memory_space<vmem>>, %arg3: memref<1x96xf32, #tpu.memory_space<vmem>>, %arg4: memref<32x32xf32, #tpu.memory_space<vmem>>, %arg5: memref<1x32xf32, #tpu.memory_space<vmem>>, %arg6: memref<1x4x8x8xf32, #tpu.memory_space<vmem>>, %arg7: memref<1x8x32xf32, #tpu.memory_space<vmem>>, %arg8: memref<1x8x96xf32, #tpu.memory_space<vmem>>, %arg9: memref<1x8x32xf32, #tpu.memory_space<vmem>>) attributes {dimension_semantics = [#tpu.dimension_semantics<parallel>], iteration_bounds = array<i64: 2>, scalar_prefetch = 0 : i64, scratch_operands = 2 : i64, tpu.core_type = #tpu.core_type<tc>, window_params = [{transform_indices = @transform_0, window_bounds = array<i64: 1, 8, 32>}, {pipeline_mode = #tpu.pipeline_mode<synchronous>, transform_indices = @transform_1, window_bounds = array<i64: 32, 96>}, {pipeline_mode = #tpu.pipeline_mode<synchronous>, transform_indices = @transform_2, window_bounds = array<i64: 1, 96>}, {pipeline_mode = #tpu.pipeline_mode<synchronous>, transform_indices = @transform_3, window_bounds = array<i64: 32, 32>}, {pipeline_mode = #tpu.pipeline_mode<synchronous>, transform_indices = @transform_4, window_bounds = array<i64: 1, 32>}, {transform_indices = @transform_5, window_bounds = array<i64: 1, 4, 8, 8>}, {transform_indices = @transform_6, window_bounds = array<i64: 1, 8, 32>}]} {
    %c0 = arith.constant 0 : index
    %c0_0 = arith.constant 0 : index
    %c0_1 = arith.constant 0 : index
    %0 = vector.load %arg1[%c0, %c0_0, %c0_1] : memref<1x8x32xf32, #tpu.memory_space<vmem>>, vector<1x8x32xf32>
    %1 = vector.shape_cast %0 : vector<1x8x32xf32> to vector<8x32xf32>
    %c0_2 = arith.constant 0 : index
    %c0_3 = arith.constant 0 : index
    %2 = vector.load %arg2[%c0_2, %c0_3] : memref<32x96xf32, #tpu.memory_space<vmem>>, vector<32x96xf32>
    %cst = arith.constant dense<0.000000e+00> : vector<8x96xf32>
    %3 = tpu.matmul %1, %2, %cst {dimension_numbers = #tpu.dot_dimension_numbers<[1], [0], [0], [1], [0, 0, 1, 1], [], []>} : vector<8x32xf32>, vector<32x96xf32>, vector<8x96xf32> -> vector<8x96xf32>
    %c0_4 = arith.constant 0 : index
    %c0_5 = arith.constant 0 : index
    %4 = vector.load %arg3[%c0_4, %c0_5] : memref<1x96xf32, #tpu.memory_space<vmem>>, vector<1x96xf32>
    %5 = vector.broadcast %4 : vector<1x96xf32> to vector<8x96xf32>
    %6 = arith.addf %3, %5 : vector<8x96xf32>
    %7 = vector.shape_cast %6 : vector<8x96xf32> to vector<1x8x96xf32>
    %c0_6 = arith.constant 0 : index
    %c0_7 = arith.constant 0 : index
    %c0_8 = arith.constant 0 : index
    %8 = vector.load %arg8[%c0_6, %c0_7, %c0_8] : memref<1x8x96xf32, #tpu.memory_space<vmem>>, vector<1x8x96xf32>
    tpu.vector_store %arg8[%c0_6, %c0_7, %c0_8], %7 {strides = array<i32>} : memref<1x8x96xf32, #tpu.memory_space<vmem>>, vector<1x8x96xf32>,
    %c0_9 = arith.constant 0 : index
    %c0_10 = arith.constant 0 : index
    %c0_11 = arith.constant 0 : index
    %9 = vector.load %arg8[%c0_9, %c0_10, %c0_11] : memref<1x8x96xf32, #tpu.memory_space<vmem>>, vector<1x8x8xf32>
    %c0_12 = arith.constant 0 : index
    %c0_13 = arith.constant 0 : index
    %c32 = arith.constant 32 : index
    %10 = vector.load %arg8[%c0_12, %c0_13, %c32] : memref<1x8x96xf32, #tpu.memory_space<vmem>>, vector<1x8x8xf32>
    %c0_14 = arith.constant 0 : index
    %c0_15 = arith.constant 0 : index
    %c64 = arith.constant 64 : index
    %11 = vector.load %arg8[%c0_14, %c0_15, %c64] : memref<1x8x96xf32, #tpu.memory_space<vmem>>, vector<1x8x8xf32>
    "tpu.trace_start"() <{level = 10 : i32, message = "bqd,bkd->bqk"}> : () -> ()
    %cst_16 = arith.constant dense<0.000000e+00> : vector<1x8x8xf32>
    %12 = tpu.matmul %9, %10, %cst_16 {dimension_numbers = #tpu.dot_dimension_numbers<[2], [2], [1], [1], [0, 0, 0, 1, 1, 1], [0], [0]>} : vector<1x8x8xf32>, vector<1x8x8xf32>, vector<1x8x8xf32> -> vector<1x8x8xf32>
    "tpu.trace_stop"() : () -> ()
    %cst_17 = arith.constant dense<0xFF800000> : vector<1x8xf32>
    %13 = vector.multi_reduction <maximumf>, %12, %cst_17 [2] : vector<1x8x8xf32> to vector<1x8xf32>
    %14 = vector.shape_cast %13 : vector<1x8xf32> to vector<1x8x1xf32>
    %15 = vector.broadcast %14 : vector<1x8x1xf32> to vector<1x8x8xf32>
    %16 = arith.subf %12, %15 : vector<1x8x8xf32>
    %17 = math.exp %16 : vector<1x8x8xf32>
    %cst_18 = arith.constant dense<0.000000e+00> : vector<1x8xf32>
    %18 = vector.multi_reduction <add>, %17, %cst_18 [2] : vector<1x8x8xf32> to vector<1x8xf32>
    %19 = vector.shape_cast %18 : vector<1x8xf32> to vector<1x8x1xf32>
    %20 = tpu.reciprocal %19 : vector<1x8x1xf32> -> vector<1x8x1xf32>
    %21 = vector.broadcast %20 : vector<1x8x1xf32> to vector<1x8x8xf32>
    %22 = arith.mulf %17, %21 : vector<1x8x8xf32>
    %c0_19 = arith.constant 0 : index
    %c0_20 = arith.constant 0 : index
    %c0_21 = arith.constant 0 : index
    %c0_22 = arith.constant 0 : index
    %23 = vector.load %arg6[%c0_19, %c0_20, %c0_21, %c0_22] : memref<1x4x8x8xf32, #tpu.memory_space<vmem>>, vector<1x1x8x8xf32>
    %24 = vector.shape_cast %23 : vector<1x1x8x8xf32> to vector<1x8x8xf32>
    %25 = vector.shape_cast %22 : vector<1x8x8xf32> to vector<1x1x8x8xf32>
    tpu.vector_store %arg6[%c0_19, %c0_20, %c0_21, %c0_22], %25 {strides = array<i32>} : memref<1x4x8x8xf32, #tpu.memory_space<vmem>>, vector<1x1x8x8xf32>,
    "tpu.trace_start"() <{level = 10 : i32, message = "bqk,bkd->bqd"}> : () -> ()
    %cst_23 = arith.constant dense<0.000000e+00> : vector<1x8x8xf32>
    %26 = tpu.matmul %22, %11, %cst_23 {dimension_numbers = #tpu.dot_dimension_numbers<[2], [1], [1], [2], [0, 0, 0, 1, 1, 2], [0], [0]>} : vector<1x8x8xf32>, vector<1x8x8xf32>, vector<1x8x8xf32> -> vector<1x8x8xf32>
    "tpu.trace_stop"() : () -> ()
    %c0_24 = arith.constant 0 : index
    %c0_25 = arith.constant 0 : index
    %c0_26 = arith.constant 0 : index
    %27 = vector.load %arg9[%c0_24, %c0_25, %c0_26] : memref<1x8x32xf32, #tpu.memory_space<vmem>>, vector<1x8x8xf32>
    tpu.vector_store %arg9[%c0_24, %c0_25, %c0_26], %26 {strides = array<i32>} : memref<1x8x32xf32, #tpu.memory_space<vmem>>, vector<1x8x8xf32>,
    %c0_27 = arith.constant 0 : index
    %c0_28 = arith.constant 0 : index
    %c8 = arith.constant 8 : index
    %28 = vector.load %arg8[%c0_27, %c0_28, %c8] : memref<1x8x96xf32, #tpu.memory_space<vmem>>, vector<1x8x8xf32>
    %c0_29 = arith.constant 0 : index
    %c0_30 = arith.constant 0 : index
    %c40 = arith.constant 40 : index
    %29 = vector.load %arg8[%c0_29, %c0_30, %c40] : memref<1x8x96xf32, #tpu.memory_space<vmem>>, vector<1x8x8xf32>
    %c0_31 = arith.constant 0 : index
    %c0_32 = arith.constant 0 : index
    %c72 = arith.constant 72 : index
    %30 = vector.load %arg8[%c0_31, %c0_32, %c72] : memref<1x8x96xf32, #tpu.memory_space<vmem>>, vector<1x8x8xf32>
    "tpu.trace_start"() <{level = 10 : i32, message = "bqd,bkd->bqk"}> : () -> ()
    %cst_33 = arith.constant dense<0.000000e+00> : vector<1x8x8xf32>
    %31 = tpu.matmul %28, %29, %cst_33 {dimension_numbers = #tpu.dot_dimension_numbers<[2], [2], [1], [1], [0, 0, 0, 1, 1, 1], [0], [0]>} : vector<1x8x8xf32>, vector<1x8x8xf32>, vector<1x8x8xf32> -> vector<1x8x8xf32>
    "tpu.trace_stop"() : () -> ()
    %cst_34 = arith.constant dense<0xFF800000> : vector<1x8xf32>
    %32 = vector.multi_reduction <maximumf>, %31, %cst_34 [2] : vector<1x8x8xf32> to vector<1x8xf32>
    %33 = vector.shape_cast %32 : vector<1x8xf32> to vector<1x8x1xf32>
    %34 = vector.broadcast %33 : vector<1x8x1xf32> to vector<1x8x8xf32>
    %35 = arith.subf %31, %34 : vector<1x8x8xf32>
    %36 = math.exp %35 : vector<1x8x8xf32>
    %cst_35 = arith.constant dense<0.000000e+00> : vector<1x8xf32>
    %37 = vector.multi_reduction <add>, %36, %cst_35 [2] : vector<1x8x8xf32> to vector<1x8xf32>
    %38 = vector.shape_cast %37 : vector<1x8xf32> to vector<1x8x1xf32>
    %39 = tpu.reciprocal %38 : vector<1x8x1xf32> -> vector<1x8x1xf32>
    %40 = vector.broadcast %39 : vector<1x8x1xf32> to vector<1x8x8xf32>
    %41 = arith.mulf %36, %40 : vector<1x8x8xf32>
    %c0_36 = arith.constant 0 : index
    %c1 = arith.constant 1 : index
    %c0_37 = arith.constant 0 : index
    %c0_38 = arith.constant 0 : index
    %42 = vector.load %arg6[%c0_36, %c1, %c0_37, %c0_38] : memref<1x4x8x8xf32, #tpu.memory_space<vmem>>, vector<1x1x8x8xf32>
    %43 = vector.shape_cast %42 : vector<1x1x8x8xf32> to vector<1x8x8xf32>
    %44 = vector.shape_cast %41 : vector<1x8x8xf32> to vector<1x1x8x8xf32>
    tpu.vector_store %arg6[%c0_36, %c1, %c0_37, %c0_38], %44 {strides = array<i32>} : memref<1x4x8x8xf32, #tpu.memory_space<vmem>>, vector<1x1x8x8xf32>,
    "tpu.trace_start"() <{level = 10 : i32, message = "bqk,bkd->bqd"}> : () -> ()
    %cst_39 = arith.constant dense<0.000000e+00> : vector<1x8x8xf32>
    %45 = tpu.matmul %41, %30, %cst_39 {dimension_numbers = #tpu.dot_dimension_numbers<[2], [1], [1], [2], [0, 0, 0, 1, 1, 2], [0], [0]>} : vector<1x8x8xf32>, vector<1x8x8xf32>, vector<1x8x8xf32> -> vector<1x8x8xf32>
    "tpu.trace_stop"() : () -> ()
    %c0_40 = arith.constant 0 : index
    %c0_41 = arith.constant 0 : index
    %c8_42 = arith.constant 8 : index
    %46 = vector.load %arg9[%c0_40, %c0_41, %c8_42] : memref<1x8x32xf32, #tpu.memory_space<vmem>>, vector<1x8x8xf32>
    tpu.vector_store %arg9[%c0_40, %c0_41, %c8_42], %45 {strides = array<i32>} : memref<1x8x32xf32, #tpu.memory_space<vmem>>, vector<1x8x8xf32>,
    %c0_43 = arith.constant 0 : index
    %c0_44 = arith.constant 0 : index
    %c16 = arith.constant 16 : index
    %47 = vector.load %arg8[%c0_43, %c0_44, %c16] : memref<1x8x96xf32, #tpu.memory_space<vmem>>, vector<1x8x8xf32>
    %c0_45 = arith.constant 0 : index
    %c0_46 = arith.constant 0 : index
    %c48 = arith.constant 48 : index
    %48 = vector.load %arg8[%c0_45, %c0_46, %c48] : memref<1x8x96xf32, #tpu.memory_space<vmem>>, vector<1x8x8xf32>
    %c0_47 = arith.constant 0 : index
    %c0_48 = arith.constant 0 : index
    %c80 = arith.constant 80 : index
    %49 = vector.load %arg8[%c0_47, %c0_48, %c80] : memref<1x8x96xf32, #tpu.memory_space<vmem>>, vector<1x8x8xf32>
    "tpu.trace_start"() <{level = 10 : i32, message = "bqd,bkd->bqk"}> : () -> ()
    %cst_49 = arith.constant dense<0.000000e+00> : vector<1x8x8xf32>
    %50 = tpu.matmul %47, %48, %cst_49 {dimension_numbers = #tpu.dot_dimension_numbers<[2], [2], [1], [1], [0, 0, 0, 1, 1, 1], [0], [0]>} : vector<1x8x8xf32>, vector<1x8x8xf32>, vector<1x8x8xf32> -> vector<1x8x8xf32>
    "tpu.trace_stop"() : () -> ()
    %cst_50 = arith.constant dense<0xFF800000> : vector<1x8xf32>
    %51 = vector.multi_reduction <maximumf>, %50, %cst_50 [2] : vector<1x8x8xf32> to vector<1x8xf32>
    %52 = vector.shape_cast %51 : vector<1x8xf32> to vector<1x8x1xf32>
    %53 = vector.broadcast %52 : vector<1x8x1xf32> to vector<1x8x8xf32>
    %54 = arith.subf %50, %53 : vector<1x8x8xf32>
    %55 = math.exp %54 : vector<1x8x8xf32>
    %cst_51 = arith.constant dense<0.000000e+00> : vector<1x8xf32>
    %56 = vector.multi_reduction <add>, %55, %cst_51 [2] : vector<1x8x8xf32> to vector<1x8xf32>
    %57 = vector.shape_cast %56 : vector<1x8xf32> to vector<1x8x1xf32>
    %58 = tpu.reciprocal %57 : vector<1x8x1xf32> -> vector<1x8x1xf32>
    %59 = vector.broadcast %58 : vector<1x8x1xf32> to vector<1x8x8xf32>
    %60 = arith.mulf %55, %59 : vector<1x8x8xf32>
    %c0_52 = arith.constant 0 : index
    %c2 = arith.constant 2 : index
    %c0_53 = arith.constant 0 : index
    %c0_54 = arith.constant 0 : index
    %61 = vector.load %arg6[%c0_52, %c2, %c0_53, %c0_54] : memref<1x4x8x8xf32, #tpu.memory_space<vmem>>, vector<1x1x8x8xf32>
    %62 = vector.shape_cast %61 : vector<1x1x8x8xf32> to vector<1x8x8xf32>
    %63 = vector.shape_cast %60 : vector<1x8x8xf32> to vector<1x1x8x8xf32>
    tpu.vector_store %arg6[%c0_52, %c2, %c0_53, %c0_54], %63 {strides = array<i32>} : memref<1x4x8x8xf32, #tpu.memory_space<vmem>>, vector<1x1x8x8xf32>,
    "tpu.trace_start"() <{level = 10 : i32, message = "bqk,bkd->bqd"}> : () -> ()
    %cst_55 = arith.constant dense<0.000000e+00> : vector<1x8x8xf32>
    %64 = tpu.matmul %60, %49, %cst_55 {dimension_numbers = #tpu.dot_dimension_numbers<[2], [1], [1], [2], [0, 0, 0, 1, 1, 2], [0], [0]>} : vector<1x8x8xf32>, vector<1x8x8xf32>, vector<1x8x8xf32> -> vector<1x8x8xf32>
    "tpu.trace_stop"() : () -> ()
    %c0_56 = arith.constant 0 : index
    %c0_57 = arith.constant 0 : index
    %c16_58 = arith.constant 16 : index
    %65 = vector.load %arg9[%c0_56, %c0_57, %c16_58] : memref<1x8x32xf32, #tpu.memory_space<vmem>>, vector<1x8x8xf32>
    tpu.vector_store %arg9[%c0_56, %c0_57, %c16_58], %64 {strides = array<i32>} : memref<1x8x32xf32, #tpu.memory_space<vmem>>, vector<1x8x8xf32>,
    %c0_59 = arith.constant 0 : index
    %c0_60 = arith.constant 0 : index
    %c24 = arith.constant 24 : index
    %66 = vector.load %arg8[%c0_59, %c0_60, %c24] : memref<1x8x96xf32, #tpu.memory_space<vmem>>, vector<1x8x8xf32>
    %c0_61 = arith.constant 0 : index
    %c0_62 = arith.constant 0 : index
    %c56 = arith.constant 56 : index
    %67 = vector.load %arg8[%c0_61, %c0_62, %c56] : memref<1x8x96xf32, #tpu.memory_space<vmem>>, vector<1x8x8xf32>
    %c0_63 = arith.constant 0 : index
    %c0_64 = arith.constant 0 : index
    %c88 = arith.constant 88 : index
    %68 = vector.load %arg8[%c0_63, %c0_64, %c88] : memref<1x8x96xf32, #tpu.memory_space<vmem>>, vector<1x8x8xf32>
    "tpu.trace_start"() <{level = 10 : i32, message = "bqd,bkd->bqk"}> : () -> ()
    %cst_65 = arith.constant dense<0.000000e+00> : vector<1x8x8xf32>
    %69 = tpu.matmul %66, %67, %cst_65 {dimension_numbers = #tpu.dot_dimension_numbers<[2], [2], [1], [1], [0, 0, 0, 1, 1, 1], [0], [0]>} : vector<1x8x8xf32>, vector<1x8x8xf32>, vector<1x8x8xf32> -> vector<1x8x8xf32>
    "tpu.trace_stop"() : () -> ()
    %cst_66 = arith.constant dense<0xFF800000> : vector<1x8xf32>
    %70 = vector.multi_reduction <maximumf>, %69, %cst_66 [2] : vector<1x8x8xf32> to vector<1x8xf32>
    %71 = vector.shape_cast %70 : vector<1x8xf32> to vector<1x8x1xf32>
    %72 = vector.broadcast %71 : vector<1x8x1xf32> to vector<1x8x8xf32>
    %73 = arith.subf %69, %72 : vector<1x8x8xf32>
    %74 = math.exp %73 : vector<1x8x8xf32>
    %cst_67 = arith.constant dense<0.000000e+00> : vector<1x8xf32>
    %75 = vector.multi_reduction <add>, %74, %cst_67 [2] : vector<1x8x8xf32> to vector<1x8xf32>
    %76 = vector.shape_cast %75 : vector<1x8xf32> to vector<1x8x1xf32>
    %77 = tpu.reciprocal %76 : vector<1x8x1xf32> -> vector<1x8x1xf32>
    %78 = vector.broadcast %77 : vector<1x8x1xf32> to vector<1x8x8xf32>
    %79 = arith.mulf %74, %78 : vector<1x8x8xf32>
    %c0_68 = arith.constant 0 : index
    %c3 = arith.constant 3 : index
    %c0_69 = arith.constant 0 : index
    %c0_70 = arith.constant 0 : index
    %80 = vector.load %arg6[%c0_68, %c3, %c0_69, %c0_70] : memref<1x4x8x8xf32, #tpu.memory_space<vmem>>, vector<1x1x8x8xf32>
    %81 = vector.shape_cast %80 : vector<1x1x8x8xf32> to vector<1x8x8xf32>
    %82 = vector.shape_cast %79 : vector<1x8x8xf32> to vector<1x1x8x8xf32>
    tpu.vector_store %arg6[%c0_68, %c3, %c0_69, %c0_70], %82 {strides = array<i32>} : memref<1x4x8x8xf32, #tpu.memory_space<vmem>>, vector<1x1x8x8xf32>,
    "tpu.trace_start"() <{level = 10 : i32, message = "bqk,bkd->bqd"}> : () -> ()
    %cst_71 = arith.constant dense<0.000000e+00> : vector<1x8x8xf32>
    %83 = tpu.matmul %79, %68, %cst_71 {dimension_numbers = #tpu.dot_dimension_numbers<[2], [1], [1], [2], [0, 0, 0, 1, 1, 2], [0], [0]>} : vector<1x8x8xf32>, vector<1x8x8xf32>, vector<1x8x8xf32> -> vector<1x8x8xf32>
    "tpu.trace_stop"() : () -> ()
    %c0_72 = arith.constant 0 : index
    %c0_73 = arith.constant 0 : index
    %c24_74 = arith.constant 24 : index
    %84 = vector.load %arg9[%c0_72, %c0_73, %c24_74] : memref<1x8x32xf32, #tpu.memory_space<vmem>>, vector<1x8x8xf32>
    tpu.vector_store %arg9[%c0_72, %c0_73, %c24_74], %83 {strides = array<i32>} : memref<1x8x32xf32, #tpu.memory_space<vmem>>, vector<1x8x8xf32>,
    %c0_75 = arith.constant 0 : index
    %c0_76 = arith.constant 0 : index
    %c0_77 = arith.constant 0 : index
    %85 = vector.load %arg9[%c0_75, %c0_76, %c0_77] : memref<1x8x32xf32, #tpu.memory_space<vmem>>, vector<1x8x32xf32>
    %86 = vector.shape_cast %85 : vector<1x8x32xf32> to vector<8x32xf32>
    %c0_78 = arith.constant 0 : index
    %c0_79 = arith.constant 0 : index
    %87 = vector.load %arg4[%c0_78, %c0_79] : memref<32x32xf32, #tpu.memory_space<vmem>>, vector<32x32xf32>
    %cst_80 = arith.constant dense<0.000000e+00> : vector<8x32xf32>
    %88 = tpu.matmul %86, %87, %cst_80 {dimension_numbers = #tpu.dot_dimension_numbers<[1], [0], [0], [1], [0, 0, 1, 1], [], []>} : vector<8x32xf32>, vector<32x32xf32>, vector<8x32xf32> -> vector<8x32xf32>
    %c0_81 = arith.constant 0 : index
    %c0_82 = arith.constant 0 : index
    %89 = vector.load %arg5[%c0_81, %c0_82] : memref<1x32xf32, #tpu.memory_space<vmem>>, vector<1x32xf32>
    %90 = vector.broadcast %89 : vector<1x32xf32> to vector<8x32xf32>
    %91 = arith.addf %88, %90 : vector<8x32xf32>
    %92 = vector.shape_cast %91 : vector<8x32xf32> to vector<1x8x32xf32>
    %c0_83 = arith.constant 0 : index
    %c0_84 = arith.constant 0 : index
    %c0_85 = arith.constant 0 : index
    %93 = vector.load %arg7[%c0_83, %c0_84, %c0_85] : memref<1x8x32xf32, #tpu.memory_space<vmem>>, vector<1x8x32xf32>
    tpu.vector_store %arg7[%c0_83, %c0_84, %c0_85], %92 {strides = array<i32>} : memref<1x8x32xf32, #tpu.memory_space<vmem>>, vector<1x8x32xf32>,
    return
  }
  func.func @transform_0(%arg0: i32) -> (i32, i32, i32) {
    %c0_i32 = arith.constant 0 : i32
    %c0_i32_0 = arith.constant 0 : i32
    %c0_i32_1 = arith.constant 0 : i32
    return %arg0, %c0_i32, %c0_i32_0 : i32, i32, i32
  }
  func.func @transform_1(%arg0: i32) -> (i32, i32) {
    %c0_i32 = arith.constant 0 : i32
    %c0_i32_0 = arith.constant 0 : i32
    %c0_i32_1 = arith.constant 0 : i32
    return %c0_i32, %c0_i32_0 : i32, i32
  }
  func.func @transform_2(%arg0: i32) -> (i32, i32) {
    %c0_i32 = arith.constant 0 : i32
    %c0_i32_0 = arith.constant 0 : i32
    %c0_i32_1 = arith.constant 0 : i32
    return %c0_i32, %c0_i32_0 : i32, i32
  }
  func.func @transform_3(%arg0: i32) -> (i32, i32) {
    %c0_i32 = arith.constant 0 : i32
    %c0_i32_0 = arith.constant 0 : i32
    %c0_i32_1 = arith.constant 0 : i32
    return %c0_i32, %c0_i32_0 : i32, i32
  }
  func.func @transform_4(%arg0: i32) -> (i32, i32) {
    %c0_i32 = arith.constant 0 : i32
    %c0_i32_0 = arith.constant 0 : i32
    %c0_i32_1 = arith.constant 0 : i32
    return %c0_i32, %c0_i32_0 : i32, i32
  }
  func.func @transform_5(%arg0: i32) -> (i32, i32, i32, i32) {
    %c0_i32 = arith.constant 0 : i32
    %c0_i32_0 = arith.constant 0 : i32
    %c0_i32_1 = arith.constant 0 : i32
    %c0_i32_2 = arith.constant 0 : i32
    return %arg0, %c0_i32, %c0_i32_0, %c0_i32_1 : i32, i32, i32, i32
  }
  func.func @transform_6(%arg0: i32) -> (i32, i32, i32) {
    %c0_i32 = arith.constant 0 : i32
    %c0_i32_0 = arith.constant 0 : i32
    %c0_i32_1 = arith.constant 0 : i32
    return %arg0, %c0_i32, %c0_i32_0 : i32, i32, i32
  }
}

</mosaic_0001>

<bundles_post_ra>
// kernel: tpu_custom_call.1
= control target key start
LH: loop header
LB: loop body
LE: loop exit
PB: predicated region body
PF: predicated region fallthrough
CT: control target
= control target key end

     0   :  { %12 = vsyncpa [#allocation5], 0  ;;  %s2183_s0 = inlined_call_operand.hbm [shape: f32[2,8,32], index: 0, kind: input, shape index: {}]   ;;  %s2184_s1 = inlined_call_operand.hbm [shape: f32[32,96], index: 1, kind: input, shape index: {}]   ;;  %s2185_s2 = inlined_call_operand.vmem [shape: f32[1,96], index: 2, kind: input, shape index: {}]   ;;  %s2186_s3 = inlined_call_operand.hbm [shape: f32[32,32], index: 3, kind: input, shape index: {}]   ;;  %s2187_s4 = inlined_call_operand.vmem [shape: f32[1,32], index: 4, kind: input, shape index: {}]   ;;  %s2188_s5 = inlined_call_operand.hbm [shape: f32[2,4,8,8], index: 5, kind: output, shape index: {0}]   ;;  %s2189_s6 = inlined_call_operand.hbm [shape: f32[2,8,32], index: 6, kind: output, shape index: {1}]  }
   0x1   :  { %14 = vsyncpa [#allocation5 + $0x1], 0 }
   0x2   :  { %15 = vsyncpa [#allocation8], 0 }
   0x3   :  { %16 = vsyncpa [#allocation6], 0 }
   0x4   :  { %18 = vsyncpa [#allocation6 + $0x1], 0 }
   0x5   :  { %19 = vsyncpa [#allocation12], 0 }
   0x6   :  { %21 = vsyncpa [#allocation12 + $0x1], 0  ;;  %s1828_s21 = smov 0   ;;  %s1830_s22 = smov 0  }
   0x7   :  { %s1832_s23 = smov 0   ;;  %s1834_s24 = smov 0  }
   0x8 LB: > { %s1849_s25 = sadd.s32 4294967295, %s1766_s24   ;;  %s1330_s26 = sadd.s32 4294967294, %s1766_s24   ;;  %s1766_s24 = sphi %s1834_s24, %s2209_s24   ;;  %s1762_s23 = sphi %s1832_s23, %s2208_s23   ;;  %s1758_s22 = sphi %s1830_s22, %s2207_s22   ;;  %s1754_s21 = sphi %s1828_s21, %s2206_s21  }
   0x9   : > { %p47_p0 = scmp.ne.s32.totalorder %s1758_s22, %s1754_s21  ;;  %p2190_p1 = scmp.eq.s32.totalorder %s1849_s25, 0 }
   0xa   : > { %p161_p3 = scmp.eq.s32.totalorder %s1330_s26, 1  ;;  %p1331_p5 = scmp.ge.s32.totalorder %s1766_s24, 1 }
   0xb   : > { %p1858_p4 = por %p2190_p1, %p47_p0  ;;  %p194_p7 = scmp.lt.s32.totalorder %s1766_s24, 3 }
   0xc   : > { %p1863_p6 = por %p161_p3, %p47_p0  ;;  %s1768_s30 = smov [#allocation7]  }
   0xd   : > { %s2193_s27 = scalar_select %p1858_p4, 1, 0 }
   0xe   : > { %s2194_s28 = scalar_select %p1863_p6, 1, 0 }
   0xf   : > { %p1868_p8 = pnand %p1331_p5, %p194_p7  ;;  %s206_s7 = sshll.u32 %s1768_s30, 4  ;;  %s1872_s7 = int_to_ptr.vmem [resolvable:$true] %s206_s7 }
  0x10   : > { %s1769_s9 = smov [#allocation9]   ;;  %s1578_s13 = scalar_lea.hbm %s2184_s1, 512 }
  0x11   : > { %p1484_p9 = pneg %p1868_p8  ;;  %s222_s10 = sshll.u32 %s1769_s9, 4  ;;  %s1883_s10 = int_to_ptr.vmem [resolvable:$true] %s222_s10 }
  0x12   : > { %p1579_p12 = scmp.ne.s32.totalorder %s2184_s1, %s1578_s13  ;;  %p1585_p5 = scmp.lt.u32.totalorder %s1578_s13, %s2184_s1 }
  0x13   : > { %p1879_p11 = pnand %p1484_p9, %p2190_p1 }
  0x15   : > { %p1580_p13 = pneg %p1879_p11 }
  0x17   : > { %p1581_p0 = pnand %p1580_p13, %p1579_p12 }
  0x19   : > { %p1582_p3 = pneg %p1581_p0 }
  0x1b   : > { %p1587_p7 = pnand %p1585_p5, %p1582_p3 }
  0x1d   : > { %1590 = shalt.err (!%p1587_p7)
}
  0x1e   : > { %s1591_s18 = scalar_lea.vmem %s1872_s7, 512  ;;  %p1599_p2 = scmp.lt.s32.totalorder %s1872_s7, %s1872_s7 }
  0x1f   : > { %p1592_p9 = scmp.ne.s32.totalorder %s1872_s7, %s1591_s18  ;;  %p1600_p12 = scmp.lt.s32.totalorder %s1591_s18, %s1591_s18 }
  0x21   : > { %p1594_p10 = pnand %p1592_p9, %p1580_p13  ;;  %p1601_p0 = por %p1600_p12, %p1599_p2 }
  0x23   : > { %p1595_p1 = pneg %p1594_p10 }
  0x25   : > { %p1602_p6 = pnand %p1601_p0, %p1595_p1 }
  0x27   : > { %1605 = shalt.err (!%p1602_p6)
}
  0x28   : > { %s1770_s19 = smov 128   ;;  %s1771_s20 = smov 8  }
  0x29   : > { %1487 = dma.hbm_to_vmem [thread:$0]  (!%p1879_p11), %s2184_s1, 512, %s1872_s7, [#allocation8], %s1770_s19, %s1770_s19, %s1771_s20  }
  0x2a   : > { %s1606_s12 = scalar_lea.hbm %s2186_s3, 512 }
  0x2b   : > { %p1607_p2 = scmp.ne.s32.totalorder %s2186_s3, %s1606_s12  ;;  %p1613_p10 = scmp.lt.u32.totalorder %s1606_s12, %s2186_s3 }
  0x2d   : > { %p1609_p1 = pnand %p1607_p2, %p1580_p13 }
  0x2f   : > { %p1610_p6 = pneg %p1609_p1 }
  0x31   : > { %p1615_p3 = pnand %p1613_p10, %p1610_p6 }
  0x33   : > { %1618 = shalt.err (!%p1615_p3)
}
  0x34   : > { %s1619_s7 = scalar_lea.vmem %s1883_s10, 512  ;;  %p1627_p12 = scmp.lt.s32.totalorder %s1883_s10, %s1883_s10 }
  0x35   : > { %p1620_p5 = scmp.ne.s32.totalorder %s1883_s10, %s1619_s7  ;;  %p1628_p0 = scmp.lt.s32.totalorder %s1619_s7, %s1619_s7 }
  0x37   : > { %p1622_p7 = pnand %p1620_p5, %p1580_p13  ;;  %p1629_p2 = por %p1628_p0, %p1627_p12 }
  0x39   : > { %p1623_p9 = pneg %p1622_p7 }
  0x3b   : > { %p1630_p1 = pnand %p1629_p2, %p1623_p9 }
  0x3d   : > { %1633 = shalt.err (!%p1630_p1)
}
  0x3e   : > { %1490 = dma.hbm_to_vmem [thread:$0]  (!%p1879_p11), %s2186_s3, 512, %s1883_s10, [#allocation8], %s1770_s19, %s1770_s19, %s1771_s20  }
  0x3f   : > { %s1938_s26 = sadd.s32 1, %s1766_s24   ;;  %s34_s8 = sadd.s32 1, %s1762_s23 }
  0x40   : > { %s31_s30 = ssub.s32 %s1766_s24, %s1938_s26  ;;  %p41_p13 = scmp.ne.s32.totalorder %s1762_s23, %s1758_s22 }
  0x41   : > { %p32_p6 = scmp.eq.s32.totalorder %s31_s30, 0  ;;  %p42_p10 = scmp.eq.s32.totalorder %s1766_s24, 0 }
  0x42   : > { %p2197_p3 = scmp.eq.s32.totalorder %s1849_s25, 1  ;;  %p1504_p7 = scmp.lt.s32.totalorder %s1766_s24, 2 }
  0x43   : > { %s1954_s11 = scalar_select %p32_p6, %s1762_s23, %s34_s8  }
  0x44   : > { %p1948_p5 = por %p2197_p3, %p41_p13  ;;  %p43_p9 = por %p42_p10, %p41_p13 }
  0x45   : > { %s239_s12 = sand.u32 1, %s1762_s23   ;;  %s1336_s10 = sshll.u32 %s1766_s24, 7 }
  0x46   : > { %s2198_s9 = scalar_select %p1948_p5, 1, 0 }
  0x47   : > { %s1335_s13 = sshll.u32 %s239_s12, 3  ;;  %s1961_s14 = scalar_lea.hbm %s2183_s0, %s1336_s10 }
  0x48   : > { %s243_s15 = scalar_lea.vmem [#allocation4], %s1335_s13  ;;  %p1965_p11 = pnand %p1504_p7, %p43_p9 }
  0x49   : > { %s250_s16 = sshll.u32 %s243_s15, 4  ;;  %s240_s17 = scalar_lea.sflag [#allocation5], %s239_s12  ;;  %s1963_s16 = int_to_ptr.vmem [resolvable:$true] %s250_s16 }
  0x4a   : > { %s1634_s18 = scalar_lea.hbm %s1961_s14, 128  ;;  %p1636_p0 = pneg %p1965_p11 }
  0x4b   : > { %p1635_p12 = scmp.ne.s32.totalorder %s1961_s14, %s1634_s18  ;;  %s1639_s13 = scalar_lea.hbm %s2183_s0, 256 }
  0x4c   : > { %p1640_p13 = scmp.lt.u32.totalorder %s1961_s14, %s2183_s0  ;;  %p1641_p6 = scmp.lt.u32.totalorder %s1639_s13, %s1634_s18 }
  0x4d   : > { %p1637_p2 = pnand %p1636_p0, %p1635_p12  ;;  %p1643_p3 = scmp.lt.u32.totalorder %s1634_s18, %s1961_s14 }
  0x4e   : > { %p1642_p10 = por %p1641_p6, %p1640_p13 }
  0x4f   : > { %p1638_p1 = pneg %p1637_p2 }
  0x50   : > { %p1644_p7 = por %p1643_p3, %p1642_p10 }
  0x52   : > { %p1645_p9 = pnand %p1644_p7, %p1638_p1 }
  0x54   : > { %1648 = shalt.err (!%p1645_p9)
}
  0x55   : > { %s1649_s12 = scalar_lea.vmem %s1963_s16, 128  ;;  %s1772_s20 = smov [#allocation4]  }
  0x56   : > { %p1650_p12 = scmp.ne.s32.totalorder %s1963_s16, %s1649_s12  ;;  %s1654_s15 = sshll.u32 %s1772_s20, 4  ;;  %s1655_s15 = int_to_ptr.vmem [resolvable:$false] %s1654_s15 }
  0x57   : > { %s1656_s8 = scalar_lea.vmem %s1655_s15, 256  ;;  %p1657_p4 = scmp.lt.s32.totalorder %s1963_s16, %s1655_s15 }
  0x58   : > { %p1652_p2 = pnand %p1650_p12, %p1636_p0  ;;  %p1658_p13 = scmp.lt.s32.totalorder %s1656_s8, %s1649_s12 }
  0x5a   : > { %p1653_p5 = pneg %p1652_p2  ;;  %p1659_p6 = por %p1658_p13, %p1657_p4 }
  0x5c   : > { %p1660_p10 = pnand %p1659_p6, %p1653_p5 }
  0x5e   : > { %1663 = shalt.err (!%p1660_p10)
}
  0x5f   : > { %1494 = dma.hbm_to_vmem [thread:$0]  (!%p1965_p11), %s1961_s14, 128, %s1963_s16, %s240_s17  }
  0x60   : > { %259 = sbr.rel (%p1868_p8) target bundleno = 2124 (0x84c), region = 40  ;;  %s1997_s18 = sand.u32 (!%p1868_p8), 1, %s1758_s22  }
  0x61   : > { %s1338_s30 = sshll.u32 (!%p1868_p8), %s1997_s18, 3  ;;  %s262_s13 = scalar_lea.sflag (!%p1868_p8), [#allocation5], %s1997_s18 }
  0x62   : > { %s265_s10 = scalar_lea.vmem (!%p1868_p8), [#allocation4], %s1338_s30  ;;  %p2200_p4 = scmp.ne.s32.totalorder (!%p1868_p8), %s2193_s27, 0 }
  0x67   : > { %1737 = dma.done.wait (%p2200_p4), %s262_s13, 128  }
  0x68   : > { %1739 = vsyncadd (%p2200_p4), %s262_s13, 4294967168  ;;  %p2201_p5 = scmp.eq.s32.totalorder %s1849_s25, 0 }
  0x6a   : > { %1741 = dma.done.wait (%p2201_p5), [#allocation8], 1024   ;;  %p2202_p8 = pmov %p2201_p5 }
  0x6b   : > { %v1773_v0 = vmov 0.0|0.0   ;;  %vm1774_vm0 = vmmov 0   ;;  %v1775_v1 = vmov 0.0   ;;  %v308_v2 = vld [vmem:[#allocation7] sm:$0xff]  ;;  %v309_v3 = vld [vmem:[#allocation7 + $0x8] sm:$0xff]  ;;  %v310_v4 = vld [vmem:[#allocation7 + $0x10] sm:$0xff] }
  0x6c   : > { %1743 = vsyncadd (%p2202_p8), [#allocation8], 4294966272  ;;  %1458 = vmatprep.subr.bf16.mxu0 %v1773_v0  ;;  %1404 = vmatprep.mubr.msk.f32.mxu0 %vm1774_vm0, %v1775_v1  ;;  %v1459_v5 = vpack.c.bf16 %v309_v3, %v308_v2  ;;  %v311_v6 = vld [vmem:[#allocation7 + $0x18] sm:$0xff]  ;;  %vm319_vm1 = vcmask 261120   ;;  %v1343_v9 = vld [vmem:[%s2185_s2] ss:$0 sm:$0xff] }
  0x6d   : > { %1407 = vmatprep.subr.mxu1 %v1775_v1  ;;  %1409 = vmatprep.mubr.msk.f32.mxu1 %vm1774_vm0, %v1775_v1  ;;  %v1462_v7 = vpack.c.bf16 %v311_v6, %v310_v4  ;;  %v307_v8 = vld [vmem:[%s265_s10] sm:$0xff]  ;;  %vm393_vm2 = vcmask 785408   ;;  %s1776_s14 = smov 64   ;;  %s1777_s16 = smov 96   ;;  %vm399_vm3 = vcmask 64512   ;;  %vm736_vm4 = vcmask 130112  }
  0x6e   : > { %1460 = vmatpush3.bf16.msra.mxu0 %v1459_v5  ;;  %s1778_s7 = smov 88   ;;  %s1779_s17 = smov 120   ;;  %vm911_vm5 = vcmask 195712   ;;  %vm1086_vm6 = vcmask 261312  }
  0x6f   : > { %1461 = vmatprep.subr.bf16.mxu0 %v1773_v0  ;;  %s1780_s19 = smov 80   ;;  %s1781_s12 = smov 72  }
  0x70   : > { %s1782_s20 = smov 112   ;;  %s1783_s15 = smov 104  }
  0x71   : > { %s1341_s8 = sshll.u32 %s1997_s18, 5  ;;  %s1784_s10 = smov 56  }
  0x72   : > { %1463 = vmatpush3.bf16.msra.mxu0 %v1462_v7  ;;  %s2055_s13 = scalar_lea.vmem [#allocation10], %s1341_s8  ;;  %s1785_s27 = smov 48  }
  0x73   : > { %1427 = vmatprep.subr.mxu0 %v1775_v1  ;;  %s1786_s29 = smov 40   ;;  %s1175_s8 = scalar_lea.sflag [#allocation6], %s1997_s18 }
  0x74   : > { %p2203_p0 = scmp.ne.s32.totalorder %s2198_s9, 0 }
  0x75   : > { %1405 = vmatmul.mubr.msk.f32.vlgmr.msra.gmra.mrb[0].mxu0 %vm319_vm1, %v307_v8 }
  0x76   : > { %1429 = vmatprep.mubr.msk.f32.mxu0 %vm1774_vm0, %v1775_v1 }
 0x148   : > { %v389_v10 = vpop.f32.mrb[0].mxu0 }
 0x149   : > { %v390_v11 = vadd.f32 %v1343_v9, %v389_v10  ;;  %v1406_v12 = vpop.f32.mrb[1].mxu0  ;;  %v1089_v9 = vld [vmem:[#allocation9] sm:$0xff]  ;;  %v1090_v10 = vld [vmem:[#allocation9 + $0x8] sm:$0xff] }
 0x14a   : > { %v1091_v12 = vld [vmem:[#allocation9 + $0x10] sm:$0xff] }
 0x14b   : > { %394 = vst.msk [vmem:[#allocation2] sm:$0xff] %vm393_vm2, %v390_v11  ;;  %v1465_v11 = vpack.c.bf16 %v1090_v10, %v1089_v9 }
 0x152   : > { %v2025_v13 = vld [vmem:[#allocation2] sm:$0xff] }
 0x153   : > { %486 = vrot.lane.b32.xlu1 %v2025_v13, %s1776_s14  ;;  %397 = vrot.lane.b32.xlu0 %v2025_v13, %s1777_s16  ;;  %s1787_s14 = smov 8   ;;  %s1788_s16 = smov 16  }
 0x157   : > { %567 = vrot.lane.b32.xlu1 %v2025_v13, %s1778_s7  ;;  %s1789_s7 = smov 24  }
 0x15b   : > { %565 = vrot.lane.b32.xlu1 %v2025_v13, %s1779_s17  ;;  %s1369_s17 = sshll.u32 %s1849_s25, 9 }
 0x15f   : > { %742 = vrot.lane.b32.xlu1 %v2025_v13, %s1780_s19 }
 0x1c5   : > { %v487_v14 = vpop.permute.xlu1 %486  ;;  %v398_v15 = vpop.permute.xlu0 %397 }
 0x1c6   : > { %1408 = vmatpush3.xpose.msk.msra.mxu1 %vm399_vm3, %v398_v15 }
 0x1c7   : > { %1412 = vmatprep.subr.mxu1 %v1775_v1 }
 0x1c9   : > { %v568_v16 = vpop.permute.xlu1 %567  ;;  %1410 = vmatmul.mubr.msk.f32.vlgmr.msra.gmra.mrb[0].mxu1 %vm399_vm3, %v2025_v13 }
 0x1ca   : > { %1413 = vmatpush3.msra.mxu1 %v487_v14  ;;  %1414 = vmatprep.mubr.msk.f32.mxu1 %vm1774_vm0, %v1775_v1 }
 0x1cb   : > { %1417 = vmatprep.subr.mxu1 %v1775_v1 }
 0x1cd   : > { %v566_v17 = vpop.permute.xlu1 %565 }
 0x1d1   : > { %v743_v18 = vpop.permute.xlu1 %742 }
 0x1d2   : > { %1428 = vmatpush3.xpose.msk.msra.mxu0 %vm399_vm3, %v743_v18 }
 0x1d3   : > { %1437 = vmatprep.subr.mxu0 %v1775_v1 }
 0x29c   : > { %v470_v19 = vpop.f32.mrb[0].mxu1 }
 0x29d   : > { %v1411_v20 = vpop.f32.mrb[1].mxu1  ;;  %v474_v21 = vsel %vm399_vm3, %v470_v19, -inf }
 0x29e   : > { %475 = vmax.xlane.f32.xlu0 %v474_v21 }
 0x2b4   : > { %917 = vrot.lane.b32.xlu0 %v2025_v13, %s1781_s12 }
 0x32b   : > { %v476_v22 = vpop.xlane.xlu0 %475 }
 0x32c   : > { %v477_v23 = vsub.f32 %v470_v19, %v476_v22 }
 0x32e   : > { %v478_v24 = vmul.f32 1.442695, %v477_v23 }
 0x32f   : > { %v918_v29 = vpop.permute.xlu0 %917 }
 0x330   : > { %1562 = vpow2.f32 %v478_v24 }
 0x33a   : > { %v1563_v25 = vpop.eup %1562 }
 0x33b   : > { %v480_v26 = vsel %vm399_vm3, %v1563_v25, 0.0 }
 0x33c   : > { %481 = vadd.xlane.f32.xlu1 %v480_v26 }
 0x34d   : > { %740 = vrot.lane.b32.xlu1 %v2025_v13, %s1782_s20  ;;  %s2099_s20 = scalar_lea.hbm %s2188_s5, %s1369_s17 }
 0x351   : > { %915 = vrot.lane.b32.xlu1 %v2025_v13, %s1783_s15  ;;  %s1193_s15 = sshll.u32 %s2055_s13, 4  ;;  %s2102_s15 = int_to_ptr.vmem [resolvable:$true] %s1193_s15 }
 0x3c9   : > { %v482_v27 = vpop.xlane.xlu1 %481 }
 0x3ca   : > { %1564 = vrcp.f32 %v482_v27 }
 0x3cd   : > { %v741_v28 = vpop.permute.xlu1 %740 }
 0x3ce   : > { %1430 = vmatmul.mubr.msk.f32.vlgmr.msra.gmra.mrb[2].mxu0 %vm399_vm3, %v741_v28 }
 0x3cf   : > { %1438 = vmatpush3.xpose.msk.msra.mxu0 %vm399_vm3, %v918_v29  ;;  %1439 = vmatprep.mubr.msk.f32.mxu0 %vm1774_vm0, %v1775_v1 }
 0x3d0   : > { %1464 = vmatprep.subr.bf16.mxu0 %v1773_v0 }
 0x3d1   : > { %v916_v30 = vpop.permute.xlu1 %915 }
 0x3d2   : > { %1440 = vmatmul.mubr.msk.f32.vlgmr.msra.gmra.mrb[4].mxu0 %vm399_vm3, %v916_v30 }
 0x3d3   : > { %1455 = vmatprep.mubr.msk.f32.mxu0 %vm1774_vm0, %v1775_v1  ;;  %1466 = vmatpush3.bf16.msra.mxu0 %v1465_v11 }
 0x3d4   : > { %v1565_v31 = vpop.eup %1564  ;;  %1467 = vmatprep.subr.bf16.mxu0 %v1773_v0 }
 0x3d5   : > { %v484_v32 = vmul.f32 %v1565_v31, %v1563_v25 }
 0x3d7   : > { %485 = vst.msk [vmem:[%s2055_s13] sm:$0xff] %vm399_vm3, %v484_v32  ;;  %1415 = vmatmul.mubr.msk.f32.vlgmr.msra.gmra.mrb[2].mxu1 %vm399_vm3, %v484_v32 }
 0x3d8   : > { %1418 = vmatpush3.xpose.msk.msra.mxu1 %vm399_vm3, %v568_v16  ;;  %1419 = vmatprep.mubr.msk.f32.mxu1 %vm1774_vm0, %v1775_v1 }
 0x3d9   : > { %1422 = vmatprep.subr.mxu1 %v1775_v1 }
 0x3db   : > { %1420 = vmatmul.mubr.msk.f32.vlgmr.msra.gmra.mrb[4].mxu1 %vm399_vm3, %v566_v17 }
 0x3dc   : > { %1424 = vmatprep.mubr.msk.f32.mxu1 %vm1774_vm0, %v1775_v1 }
 0x4a1   : > { %v814_v33 = vpop.f32.mrb[2].mxu0 }
 0x4a2   : > { %v1431_v34 = vpop.f32.mrb[3].mxu0  ;;  %v818_v35 = vsel %vm399_vm3, %v814_v33, -inf }
 0x4a3   : > { %819 = vmax.xlane.f32.xlu0 %v818_v35 }
 0x4a5   : > { %v989_v36 = vpop.f32.mrb[4].mxu0 }
 0x4a6   : > { %v1441_v37 = vpop.f32.mrb[5].mxu0  ;;  %v993_v43 = vsel %vm399_vm3, %v989_v36, -inf }
 0x4aa   : > { %v558_v38 = vpop.f32.mrb[2].mxu1 }
 0x4ab   : > { %562 = vst.msk [vmem:[#allocation3] sm:$0xff] %vm399_vm3, %v558_v38  ;;  %v1416_v39 = vpop.f32.mrb[3].mxu1 }
 0x4ae   : > { %v639_v40 = vpop.f32.mrb[4].mxu1 }
 0x4af   : > { %v1421_v41 = vpop.f32.mrb[5].mxu1  ;;  %v643_v42 = vsel %vm399_vm3, %v639_v40, -inf }
 0x4b0   : > { %644 = vmax.xlane.f32.xlu1 %v643_v42 }
 0x4b4   : > { %994 = vmax.xlane.f32.xlu1 %v993_v43 }
 0x530   : > { %v820_v44 = vpop.xlane.xlu0 %819 }
 0x531   : > { %v821_v45 = vsub.f32 %v814_v33, %v820_v44 }
 0x533   : > { %v822_v46 = vmul.f32 1.442695, %v821_v45 }
 0x535   : > { %1566 = vpow2.f32 %v822_v46 }
 0x53d   : > { %v645_v47 = vpop.xlane.xlu1 %644 }
 0x53e   : > { %v646_v55 = vsub.f32 %v639_v40, %v645_v47 }
 0x53f   : > { %v1567_v48 = vpop.eup %1566 }
 0x540   : > { %v824_v49 = vsel %vm399_vm3, %v1567_v48, 0.0  ;;  %v647_v56 = vmul.f32 1.442695, %v646_v55 }
 0x541   : > { %825 = vadd.xlane.f32.xlu1 %v824_v49  ;;  %v995_v50 = vpop.xlane.xlu1 %994 }
 0x542   : > { %v996_v51 = vsub.f32 %v989_v36, %v995_v50 }
 0x544   : > { %v997_v52 = vmul.f32 1.442695, %v996_v51 }
 0x546   : > { %1568 = vpow2.f32 %v997_v52 }
 0x547   : > { %1570 = vpow2.f32 %v647_v56 }
 0x550   : > { %v1569_v53 = vpop.eup %1568 }
 0x551   : > { %v999_v54 = vsel %vm399_vm3, %v1569_v53, 0.0  ;;  %v1571_v57 = vpop.eup %1570 }
 0x552   : > { %656 = vrot.lane.b32.xlu1 %v2025_v13, %s1784_s10  ;;  %1000 = vadd.xlane.f32.xlu0 %v999_v54  ;;  %v649_v58 = vsel %vm399_vm3, %v1571_v57, 0.0  ;;  %s1664_s10 = scalar_lea.vmem %s2102_s15, 512 }
 0x553   : > { %p1665_p11 = scmp.ne.s32.totalorder %s2102_s15, %s1664_s10 }
 0x555   : > { %p1666_p1 = pnand %p1665_p11, %p2203_p0 }
 0x557   : > { %p1667_p3 = pneg %p1666_p1 }
 0x568   : > { %831 = vrot.lane.b32.xlu0 %v2025_v13, %s1785_s27  ;;  %s1790_s27 = smov [#allocation10]  }
 0x576   : > { %650 = vadd.xlane.f32.xlu1 %v649_v58 }
 0x587   : > { %1006 = vrot.lane.b32.xlu1 %v2025_v13, %s1786_s29  ;;  %v1092_v13 = vld [vmem:[#allocation9 + $0x18] sm:$0xff]  ;;  %s1668_s29 = sshll.u32 %s1790_s27, 4  ;;  %s1669_s29 = int_to_ptr.vmem [resolvable:$false] %s1668_s29 }
 0x588   : > { %v1468_v14 = vpack.c.bf16 %v1092_v13, %v1091_v12  ;;  %p1671_p7 = scmp.lt.s32.totalorder %s2102_s15, %s1669_s29 }
 0x58a   : > { %1469 = vmatpush3.bf16.msra.mxu0 %v1468_v14 }
 0x5ce   : > { %v826_v59 = vpop.xlane.xlu1 %825 }
 0x5cf   : > { %1572 = vrcp.f32 %v826_v59 }
 0x5d2   : > { %v657_v60 = vpop.permute.xlu1 %656 }
 0x5d3   : > { %1423 = vmatpush3.msra.mxu1 %v657_v60 }
 0x5d4   : > { %1432 = vmatprep.subr.mxu1 %v1775_v1 }
 0x5d9   : > { %v1573_v61 = vpop.eup %1572 }
 0x5da   : > { %v828_v62 = vmul.f32 %v1573_v61, %v1567_v48 }
 0x5dc   : > { %1354 = vst.msk [vmem:[%s2055_s13 + $0x10] sm:$0xff] %vm399_vm3, %v828_v62 }
 0x5df   : > { %v1001_v63 = vpop.xlane.xlu0 %1000 }
 0x5e0   : > { %1574 = vrcp.f32 %v1001_v63 }
 0x5e3   : > { %v832_v7 = vpop.permute.xlu0 %831 }
 0x5ea   : > { %v1575_v2 = vpop.eup %1574 }
 0x5eb   : > { %v1003_v3 = vmul.f32 %v1575_v2, %v1569_v53 }
 0x5ed   : > { %1358 = vst.msk [vmem:[%s2055_s13 + $0x18] sm:$0xff] %vm399_vm3, %v1003_v3 }
 0x603   : > { %v651_v4 = vpop.xlane.xlu1 %650 }
 0x604   : > { %1576 = vrcp.f32 %v651_v4 }
 0x607   : > { %v1007_v8 = vpop.permute.xlu1 %1006 }
 0x60e   : > { %v1577_v5 = vpop.eup %1576 }
 0x60f   : > { %v653_v6 = vmul.f32 %v1577_v5, %v1571_v57 }
 0x611   : > { %1350 = vst.msk [vmem:[%s2055_s13 + $0x8] sm:$0xff] %vm399_vm3, %v653_v6  ;;  %1425 = vmatmul.mubr.msk.f32.vlgmr.msra.gmra.mrb[6].mxu1 %vm399_vm3, %v653_v6 }
 0x612   : > { %1433 = vmatpush3.msra.mxu1 %v832_v7  ;;  %1434 = vmatprep.mubr.msk.f32.mxu1 %vm1774_vm0, %v1775_v1 }
 0x613   : > { %1442 = vmatprep.subr.mxu1 %v1775_v1 }
 0x615   : > { %1435 = vmatmul.mubr.msk.f32.vlgmr.msra.gmra.mrb[8].mxu1 %vm399_vm3, %v828_v62 }
 0x616   : > { %1443 = vmatpush3.msra.mxu1 %v1007_v8  ;;  %1444 = vmatprep.mubr.msk.f32.mxu1 %vm1774_vm0, %v1775_v1 }
 0x619   : > { %1445 = vmatmul.mubr.msk.f32.vlgmr.msra.gmra.mrb[10].mxu1 %vm399_vm3, %v1003_v3 }
 0x6e4   : > { %v728_v15 = vpop.f32.mrb[6].mxu1 }
 0x6e5   : > { %733 = vrot.lane.b32.xlu1 %v728_v15, %s1787_s14  ;;  %v1426_v16 = vpop.f32.mrb[7].mxu1 }
 0x6e8   : > { %v903_v17 = vpop.f32.mrb[8].mxu1 }
 0x6e9   : > { %908 = vrot.lane.b32.xlu0 %v903_v17, %s1788_s16  ;;  %v1436_v1 = vpop.f32.mrb[9].mxu1  ;;  %s1670_s16 = scalar_lea.vmem %s1669_s29, 1024 }
 0x6ea   : > { %p1672_p9 = scmp.lt.s32.totalorder %s1670_s16, %s1664_s10 }
 0x6ec   : > { %v1078_v18 = vpop.f32.mrb[10].mxu1  ;;  %p1673_p12 = por %p1672_p9, %p1671_p7 }
 0x6ed   : > { %1083 = vrot.lane.b32.xlu1 %v1078_v18, %s1789_s7  ;;  %v1446_v19 = vpop.f32.mrb[11].mxu1 }
 0x6ee   : > { %p1674_p2 = pnand %p1673_p12, %p1667_p3 }
 0x757   : > { %v734_v20 = vpop.permute.xlu1 %733 }
 0x758   : > { %737 = vst.msk [vmem:[#allocation3] sm:$0xff] %vm736_vm4, %v734_v20 }
 0x75b   : > { %v909_v0 = vpop.permute.xlu0 %908 }
 0x75c   : > { %912 = vst.msk [vmem:[#allocation3] sm:$0xff] %vm911_vm5, %v909_v0 }
 0x75f   : > { %v1084_v21 = vpop.permute.xlu1 %1083 }
 0x760   : > { %1087 = vst.msk [vmem:[#allocation3] sm:$0xff] %vm1086_vm6, %v1084_v21 }
 0x767   : > { %v1088_v22 = vld [vmem:[#allocation3] sm:$0xff] }
 0x768   : > { %1456 = vmatmul.mubr.msk.f32.vlgmr.msra.gmra.mrb[6].mxu0 %vm319_vm1, %v1088_v22 }
 0x769   : > { %1677 = shalt.err (!%p1674_p2)
}
 0x76a   : > { %s1678_s13 = scalar_lea.hbm %s2099_s20, 512  ;;  %s1682_s19 = scalar_lea.hbm %s2188_s5, 1024 }
 0x76b   : > { %p1679_p13 = scmp.ne.s32.totalorder %s2099_s20, %s1678_s13  ;;  %p1683_p4 = scmp.lt.u32.totalorder %s2099_s20, %s2188_s5 }
 0x76c   : > { %p1684_p5 = scmp.lt.u32.totalorder %s1682_s19, %s1678_s13  ;;  %p1686_p11 = scmp.lt.u32.totalorder %s1678_s13, %s2099_s20 }
 0x76d   : > { %p1680_p6 = pnand %p1679_p13, %p2203_p0 }
 0x76e   : > { %p1685_p8 = por %p1684_p5, %p1683_p4 }
 0x76f   : > { %p1681_p10 = pneg %p1680_p6 }
 0x770   : > { %p1687_p1 = por %p1686_p11, %p1685_p8 }
 0x772   : > { %p1688_p3 = pnand %p1687_p1, %p1681_p10 }
 0x774   : > { %1691 = shalt.err (!%p1688_p3)
}
 0x775   : > { %s1791_s10 = smov 128   ;;  %v1360_v23 = vld [vmem:[%s2187_s4] ss:$0 sm:$0xff]  ;;  %s1366_s13 = sshll.u32 %s1849_s25, 7 }
 0x776   : > { %1480 = dma.vmem_to_hbm [thread:$0]  (%p2203_p0), %s2102_s15, 512, %s2099_s20, %s1175_s8, %s1791_s10, %s1791_s10, %s1787_s14  }
 0x777   : > { %s306_s7 = scalar_lea.vmem [#allocation11], %s1338_s30  ;;  %s2138_s27 = scalar_lea.hbm %s2189_s6, %s1366_s13 }
 0x778   : > { %s1209_s17 = sshll.u32 %s306_s7, 4  ;;  %s1180_s14 = scalar_lea.sflag [#allocation12], %s1997_s18  ;;  %s2140_s17 = int_to_ptr.vmem [resolvable:$true] %s1209_s17 }
 0x779   : > { %s1692_s25 = scalar_lea.vmem %s2140_s17, 128  ;;  %s1792_s30 = smov [#allocation11]  }
 0x77a   : > { %p1693_p7 = scmp.ne.s32.totalorder %s2140_s17, %s1692_s25  ;;  %s1696_s20 = sshll.u32 %s1792_s30, 4  ;;  %s1697_s20 = int_to_ptr.vmem [resolvable:$false] %s1696_s20 }
 0x77b   : > { %s1698_s15 = scalar_lea.vmem %s1697_s20, 256  ;;  %p1699_p2 = scmp.lt.s32.totalorder %s2140_s17, %s1697_s20 }
 0x77c   : > { %p1694_p9 = pnand %p1693_p7, %p2203_p0  ;;  %p1700_p13 = scmp.lt.s32.totalorder %s1698_s15, %s1692_s25 }
 0x77e   : > { %p1695_p12 = pneg %p1694_p9  ;;  %p1701_p6 = por %p1700_p13, %p1699_p2 }
 0x780   : > { %p1702_p10 = pnand %p1701_p6, %p1695_p12 }
 0x83b   : > { %v1169_v24 = vpop.f32.mrb[6].mxu0 }
 0x83c   : > { %v1170_v25 = vadd.f32 %v1360_v23, %v1169_v24  ;;  %v1457_v26 = vpop.f32.mrb[7].mxu0 }
 0x83e   : > { %1173 = vst.msk [vmem:[%s306_s7] sm:$0xff] %vm319_vm1, %v1170_v25 }
 0x83f   : > { %1705 = shalt.err (!%p1702_p10)
}
 0x840   : > { %s1706_s18 = scalar_lea.hbm %s2138_s27, 128  ;;  %s1710_s29 = scalar_lea.hbm %s2189_s6, 256 }
 0x841   : > { %p1707_p4 = scmp.ne.s32.totalorder %s2138_s27, %s1706_s18  ;;  %p1711_p11 = scmp.lt.u32.totalorder %s2138_s27, %s2189_s6 }
 0x842   : > { %p1712_p1 = scmp.lt.u32.totalorder %s1710_s29, %s1706_s18  ;;  %p1714_p7 = scmp.lt.u32.totalorder %s1706_s18, %s2138_s27 }
 0x843   : > { %p1708_p5 = pnand %p1707_p4, %p2203_p0 }
 0x844   : > { %p1713_p3 = por %p1712_p1, %p1711_p11 }
 0x845   : > { %p1709_p8 = pneg %p1708_p5 }
 0x846   : > { %p1715_p9 = por %p1714_p7, %p1713_p3 }
 0x848   : > { %p1716_p12 = pnand %p1715_p9, %p1709_p8 }
 0x84a   : > { %1719 = shalt.err (!%p1716_p12)
}
 0x84b   : > { %1481 = dma.vmem_to_hbm [thread:$0]  (%p2203_p0), %s2140_s17, 128, %s2138_s27, %s1180_s14  }
 0x84c PF: > { %s1221_s7 = sand.u32 1, %s1754_s21   ;;  %p2204_p2 = scmp.ne.s32.totalorder %s2194_s28, 0 }
 0x84d   : > { %p2205_p13 = scmp.ge.s32.totalorder %s1766_s24, 2  ;;  %s1222_s19 = scalar_lea.sflag [#allocation6], %s1221_s7 }
 0x84f   : > { %p1496_p6 = pnand %p2205_p13, %p2204_p2 }
 0x851   : > { %1745 = dma.done.wait (!%p1496_p6), %s1222_s19, 512  }
 0x852   : > { %1747 = vsyncadd (!%p1496_p6), %s1222_s19, 4294966784  ;;  %s1231_s12 = scalar_lea.sflag [#allocation12], %s1221_s7 }
 0x853   : > { %1749 = dma.done.wait (!%p1496_p6), %s1231_s12, 128  }
 0x854   : > { %1751 = vsyncadd (!%p1496_p6), %s1231_s12, 4294967168  ;;  %p24_p0 = scmp.ge.s32.totalorder %s1938_s26, 4   ;;  %s2206_s21 = smov %s1758_s22 }
 0x855   : > { %s2207_s22 = smov %s1762_s23  ;;  %s2208_s23 = smov %s1954_s11 }
 0x856   : > { %s2209_s24 = smov %s1938_s26  ;;  %26 = sbr.rel (!%p24_p0) target bundleno = 8 (0x8), region = 113 }
 0x85d   :  { %1236 = vsyncpa [#allocation5], 1 }
 0x85e   :  { %1238 = vsyncpa [#allocation5 + $0x1], 1 }
 0x85f   :  { %1239 = vsyncpa [#allocation8], 1 }
 0x860   :  { %1240 = vsyncpa [#allocation6], 1 }
 0x861   :  { %1242 = vsyncpa [#allocation6 + $0x1], 1 }
 0x862   :  { %1243 = vsyncpa [#allocation12], 1 }
 0x863   :  { %1245 = vsyncpa [#allocation12 + $0x1], 1 }

</bundles_post_ra>
